<compile_context>
chip_gen: v6e
topology: v6e:2x2x1
jax: 0.10.0
libtpu: 0.0.40
codegen_flags: <defaults>
</compile_context>

<pallas_src>
import jax
import jax.numpy as jnp
from jax.experimental import pallas as pl
from jax.experimental.pallas import tpu as pltpu


def _lstm_mirrored_kernel(car_ref, x_ref, h_ref, wx_ref, wh_ref, b_ref, hc_out_ref):
    """car_ref:  SMEM (1,)  f32  carousel scalar
    x_ref:    VMEM (B, IN)  f32
    h_ref:    VMEM (B, D)   f32
    wx_ref:   VMEM (IN, 4D) bf16  columns ordered [forget | input | output | cell]
    wh_ref:   VMEM (D, 4D)  bf16  same column order
    b_ref:    VMEM (1, 4D)  f32   stacked bias row
    hc_out_ref: VMEM (B, 2D) f32  packed [h | c] output slab (single store)
    """
    D = h_ref.shape[1]
    car = car_ref[0]  # scalar from SMEM

    # Two MXU matmuls (bf16 operands, f32 accumulation) — no HBM concat round-trip.
    z = jnp.dot(x_ref[...].astype(jnp.bfloat16), wx_ref[...],
                preferred_element_type=jnp.float32)
    z = z + jnp.dot(h_ref[...].astype(jnp.bfloat16), wh_ref[...],
                    preferred_element_type=jnp.float32)
    z = z + b_ref[...]                      # (1, 4D) broadcast over B

    # Two wide activation passes instead of four quarter-vreg ones.
    sig = jax.nn.sigmoid(z[:, : 3 * D])     # (B, 3D): forget | input | output
    g = jnp.tanh(z[:, 3 * D:])              # (B, D) : cell

    forget = sig[:, 0 * D:1 * D]
    inp = sig[:, 1 * D:2 * D]
    out = sig[:, 2 * D:3 * D]

    c = forget * car + inp * g
    h = out * c

    # Single lane-denser store of the packed [h | c] slab.
    hc_out_ref[...] = jnp.concatenate([h, c], axis=-1)


def pack_params(wx, wh, b):
    """One-time parameter repack (call at parameter-load time, NOT per step).

    wx: (4, IN, D), wh: (4, D, D), b: (4, D), gate order [forget, input, output, cell].
    Returns (wx_cat bf16 (IN, 4D), wh_cat bf16 (D, 4D), b_cat f32 (1, 4D)).
    """
    four, IN, D = wx.shape
    assert four == 4 and wh.shape == (4, D, D) and b.shape == (4, D)
    wx_cat = jnp.transpose(wx, (1, 0, 2)).reshape(IN, 4 * D).astype(jnp.bfloat16)
    wh_cat = jnp.transpose(wh, (1, 0, 2)).reshape(D, 4 * D).astype(jnp.bfloat16)
    b_cat = jnp.reshape(b, (1, 4 * D)).astype(jnp.float32)
    return wx_cat, wh_cat, b_cat


def lstm_mirrored(x, hist, carousel, wx_cat, wh_cat, b_cat):
    """Single LSTMMirrored step. x: (B, IN) f32, hist: (B, D) f32, carousel: scalar,
    packed params from pack_params(). Returns (h, c), both (B, D) f32."""
    B, _IN = x.shape
    D = hist.shape[1]
    car = jnp.asarray(carousel, jnp.float32).reshape(1)

    hc = pl.pallas_call(
        _lstm_mirrored_kernel,
        out_shape=jax.ShapeDtypeStruct((B, 2 * D), jnp.float32),
        in_specs=[
            pl.BlockSpec(memory_space=pltpu.MemorySpace.SMEM),   # carousel scalar
            pl.BlockSpec(memory_space=pltpu.MemorySpace.VMEM),   # x
            pl.BlockSpec(memory_space=pltpu.MemorySpace.VMEM),   # hist
            pl.BlockSpec(memory_space=pltpu.MemorySpace.VMEM),   # Wx fused
            pl.BlockSpec(memory_space=pltpu.MemorySpace.VMEM),   # Wh fused
            pl.BlockSpec(memory_space=pltpu.MemorySpace.VMEM),   # bias row
        ],
        out_specs=pl.BlockSpec(memory_space=pltpu.MemorySpace.VMEM),
    )(car, x.astype(jnp.float32), hist.astype(jnp.float32), wx_cat, wh_cat, b_cat)

    return hc[:, :D], hc[:, D:]


# ----------------------------------------------------------------------------
# Pure-JAX references.
# ----------------------------------------------------------------------------
def lstm_mirrored_ref_f32(x, hist, carousel, wx, wh, b):
    """Full-f32 reference mirroring the PyTorch forward semantics."""
    def gate(idx, act):
        return act(x @ wx[idx] + hist @ wh[idx] + b[idx][None, :])
    f = gate(0, jax.nn.sigmoid)
    i = gate(1, jax.nn.sigmoid)
    o = gate(2, jax.nn.sigmoid)
    g = gate(3, jnp.tanh)
    c = f * carousel + i * g
    h = o * c
    return h, c


def lstm_mirrored_ref_mixed(x, hist, carousel, wx, wh, b):
    """Reference with the kernel's exact mixed precision (bf16 matmul ops, f32 acc)."""
    IN = x.shape[1]
    D = hist.shape[1]
    wx_cat = jnp.transpose(wx, (1, 0, 2)).reshape(IN, 4 * D).astype(jnp.bfloat16)
    wh_cat = jnp.transpose(wh, (1, 0, 2)).reshape(D, 4 * D).astype(jnp.bfloat16)
    z = jnp.dot(x.astype(jnp.bfloat16), wx_cat, preferred_element_type=jnp.float32)
    z = z + jnp.dot(hist.astype(jnp.bfloat16), wh_cat, preferred_element_type=jnp.float32)
    z = z + b.reshape(1, 4 * D)
    f = jax.nn.sigmoid(z[:, 0 * D:1 * D])
    i = jax.nn.sigmoid(z[:, 1 * D:2 * D])
    o = jax.nn.sigmoid(z[:, 2 * D:3 * D])
    g = jnp.tanh(z[:, 3 * D:4 * D])
    c = f * carousel + i * g
    h = o * c
    return h, c


if __name__ == "__main__":
    B, IN, D = 8, 16, 32          # 4*D = 128 -> lane-dense fused pre-activation

    key = jax.random.PRNGKey(0)
    k_x, k_h, k_wx, k_wh, k_b = jax.random.split(key, 5)

    x = jax.random.normal(k_x, (B, IN), jnp.float32)
    hist = jax.random.normal(k_h, (B, D), jnp.float32)
    carousel = 1  # int scalar, as in the PyTorch signature

    # Parameters, gate order [forget, input, output, cell] (matches module stacking).
    wx = 0.1 * jax.random.normal(k_wx, (4, IN, D), jnp.float32)
    wh = 0.1 * jax.random.normal(k_wh, (4, D, D), jnp.float32)
    b = 0.1 * jax.random.normal(k_b, (4, D), jnp.float32)

    # One-time repack (hoisted out of the per-step path).
    wx_cat, wh_cat, b_cat = pack_params(wx, wh, b)
    wx_cat, wh_cat, b_cat = jax.block_until_ready((wx_cat, wh_cat, b_cat))

    step = jax.jit(lstm_mirrored)
    h_new, c_new = step(x, hist, carousel, wx_cat, wh_cat, b_cat)
    jax.block_until_ready((h_new, c_new))

    # Exact-plumbing check against a mixed-precision reference.
    h_mix, c_mix = lstm_mirrored_ref_mixed(x, hist, carousel, wx, wh, b)
    assert jnp.allclose(h_new, h_mix, atol=1e-4, rtol=1e-4)
    assert jnp.allclose(c_new, c_mix, atol=1e-4, rtol=1e-4)

    # Semantics check against the full-f32 module reference (bf16 matmul noise).
    h_ref, c_ref = lstm_mirrored_ref_f32(x, hist, carousel, wx, wh, b)
    assert jnp.allclose(h_new, h_ref, atol=3e-2, rtol=3e-2)
    assert jnp.allclose(c_new, c_ref, atol=3e-2, rtol=3e-2)

    print("KERNEL_OK")
</pallas_src>

<mosaic_0001>
module attributes {stable_mosaic.version = 11 : i64} {
  func.func @_lstm_mirrored_kernel(%arg0: memref<1xf32, #tpu.memory_space<smem>>, %arg1: memref<8x16xf32, #tpu.memory_space<vmem>>, %arg2: memref<8x32xf32, #tpu.memory_space<vmem>>, %arg3: memref<16x128xbf16, #tpu.memory_space<vmem>>, %arg4: memref<32x128xbf16, #tpu.memory_space<vmem>>, %arg5: memref<1x128xf32, #tpu.memory_space<vmem>>, %arg6: memref<8x64xf32, #tpu.memory_space<vmem>>) attributes {dimension_semantics = [], scalar_prefetch = 0 : i64, scratch_operands = 0 : i64, tpu.core_type = #tpu.core_type<tc>} {
    %c0 = arith.constant 0 : index
    %0 = memref.load %arg0[%c0] : memref<1xf32, #tpu.memory_space<smem>>
    %c0_0 = arith.constant 0 : index
    %c0_1 = arith.constant 0 : index
    %1 = vector.load %arg1[%c0_0, %c0_1] : memref<8x16xf32, #tpu.memory_space<vmem>>, vector<8x16xf32>
    %2 = arith.truncf %1 : vector<8x16xf32> to vector<8x16xbf16>
    %c0_2 = arith.constant 0 : index
    %c0_3 = arith.constant 0 : index
    %3 = vector.load %arg3[%c0_2, %c0_3] : memref<16x128xbf16, #tpu.memory_space<vmem>>, vector<16x128xbf16>
    %cst = arith.constant dense<0.000000e+00> : vector<8x128xf32>
    %4 = tpu.matmul %2, %3, %cst {dimension_numbers = #tpu.dot_dimension_numbers<[1], [0], [0], [1], [0, 0, 1, 1], [], []>} : vector<8x16xbf16>, vector<16x128xbf16>, vector<8x128xf32> -> vector<8x128xf32>
    %c0_4 = arith.constant 0 : index
    %c0_5 = arith.constant 0 : index
    %5 = vector.load %arg2[%c0_4, %c0_5] : memref<8x32xf32, #tpu.memory_space<vmem>>, vector<8x32xf32>
    %6 = arith.truncf %5 : vector<8x32xf32> to vector<8x32xbf16>
    %c0_6 = arith.constant 0 : index
    %c0_7 = arith.constant 0 : index
    %7 = vector.load %arg4[%c0_6, %c0_7] : memref<32x128xbf16, #tpu.memory_space<vmem>>, vector<32x128xbf16>
    %cst_8 = arith.constant dense<0.000000e+00> : vector<8x128xf32>
    %8 = tpu.matmul %6, %7, %cst_8 {dimension_numbers = #tpu.dot_dimension_numbers<[1], [0], [0], [1], [0, 0, 1, 1], [], []>} : vector<8x32xbf16>, vector<32x128xbf16>, vector<8x128xf32> -> vector<8x128xf32>
    %9 = arith.addf %4, %8 : vector<8x128xf32>
    %c0_9 = arith.constant 0 : index
    %c0_10 = arith.constant 0 : index
    %10 = vector.load %arg5[%c0_9, %c0_10] : memref<1x128xf32, #tpu.memory_space<vmem>>, vector<1x128xf32>
    %11 = vector.broadcast %10 : vector<1x128xf32> to vector<8x128xf32>
    %12 = arith.addf %9, %11 : vector<8x128xf32>
    %13 = vector.extract_strided_slice %12 {offsets = [0, 0], sizes = [8, 96], strides = [1, 1]} : vector<8x128xf32> to vector<8x96xf32>
    %14 = arith.negf %13 : vector<8x96xf32>
    %15 = math.exp %14 : vector<8x96xf32>
    %cst_11 = arith.constant 1.000000e+00 : f32
    %16 = vector.broadcast %cst_11 : f32 to vector<8x96xf32>
    %17 = arith.addf %16, %15 : vector<8x96xf32>
    %18 = arith.divf %16, %17 : vector<8x96xf32>
    %19 = vector.extract_strided_slice %12 {offsets = [0, 96], sizes = [8, 32], strides = [1, 1]} : vector<8x128xf32> to vector<8x32xf32>
    %20 = math.tanh %19 : vector<8x32xf32>
    %21 = vector.extract_strided_slice %18 {offsets = [0, 0], sizes = [8, 32], strides = [1, 1]} : vector<8x96xf32> to vector<8x32xf32>
    %22 = vector.extract_strided_slice %18 {offsets = [0, 32], sizes = [8, 32], strides = [1, 1]} : vector<8x96xf32> to vector<8x32xf32>
    %23 = vector.extract_strided_slice %18 {offsets = [0, 64], sizes = [8, 32], strides = [1, 1]} : vector<8x96xf32> to vector<8x32xf32>
    %24 = vector.broadcast %0 : f32 to vector<8x32xf32>
    %25 = arith.mulf %21, %24 : vector<8x32xf32>
    %26 = arith.mulf %22, %20 : vector<8x32xf32>
    %27 = arith.addf %25, %26 : vector<8x32xf32>
    %28 = arith.mulf %23, %27 : vector<8x32xf32>
    %29 = tpu.concatenate %28, %27 in 1 : vector<8x32xf32>, vector<8x32xf32> -> vector<8x64xf32>
    %c0_12 = arith.constant 0 : index
    %c0_13 = arith.constant 0 : index
    %30 = vector.load %arg6[%c0_12, %c0_13] : memref<8x64xf32, #tpu.memory_space<vmem>>, vector<8x64xf32>
    tpu.vector_store %arg6[%c0_12, %c0_13], %29 {strides = array<i32>} : memref<8x64xf32, #tpu.memory_space<vmem>>, vector<8x64xf32>,
    return
  }
}

</mosaic_0001>

<bundles_post_ra>
// kernel: lstm_mirrored.1
= control target key start
LH: loop header
LB: loop body
LE: loop exit
PB: predicated region body
PF: predicated region fallthrough
CT: control target
= control target key end

     0   :  { %12 = vsyncpa [#allocation4], 0  ;;  %s407_s0 = inlined_call_operand.<no memory space> [shape: f32[1], index: 0, kind: input, shape index: {}]   ;;  %s408_s1 = inlined_call_operand.hbm [shape: f32[8,16], index: 1, kind: input, shape index: {}]   ;;  %s409_s2 = inlined_call_operand.hbm [shape: f32[8,32], index: 2, kind: input, shape index: {}]   ;;  %s410_s3 = inlined_call_operand.vmem [shape: bf16[16,128], index: 3, kind: input, shape index: {}]   ;;  %s411_s4 = inlined_call_operand.hbm [shape: bf16[32,128], index: 4, kind: input, shape index: {}]   ;;  %s412_s5 = inlined_call_operand.vmem [shape: f32[1,128], index: 5, kind: input, shape index: {}]   ;;  %s413_s6 = inlined_call_operand.vmem [shape: f32[8,64], index: 6, kind: output, shape index: {}]  }
   0x1   :  { %13 = vsyncpa [#allocation6], 0  ;;  %s335_s21 = smov [#allocation5]   ;;  %s336_s23 = smov [#allocation3]  }
   0x2   :  { %s32_s22 = sshll.u32 %s335_s21, 4  ;;  %s22_s24 = sshll.u32 %s336_s23, 4  ;;  %s33_s22 = int_to_ptr.vmem [resolvable:$true] %s32_s22  ;;  %s23_s24 = int_to_ptr.vmem [resolvable:$true] %s22_s24 }
   0x3   :  { %s279_s25 = scalar_lea.vmem %s33_s22, 128  ;;  %p284_p1 = scmp.lt.s32.totalorder %s33_s22, %s33_s22 }
   0x4   :  { %p280_p0 = scmp.ne.s32.totalorder %s33_s22, %s279_s25  ;;  %p285_p2 = scmp.lt.s32.totalorder %s279_s25, %s279_s25 }
   0x6   :  { %p286_p3 = por %p285_p2, %p284_p1 }
   0x8   :  { %p287_p4 = pnand %p286_p3, %p280_p0 }
   0xa   :  { %290 = shalt.err (!%p287_p4)
}
   0xb   :  { %35 = dma.hbm_to_vmem [thread:$0]  %s409_s2, 128, %s33_s22, [#allocation6]  }
   0xc   :  { %s299_s28 = scalar_lea.vmem %s23_s24, 128  ;;  %p304_p6 = scmp.lt.s32.totalorder %s23_s24, %s23_s24 }
   0xd   :  { %p300_p5 = scmp.ne.s32.totalorder %s23_s24, %s299_s28  ;;  %p305_p7 = scmp.lt.s32.totalorder %s299_s28, %s299_s28 }
   0xf   :  { %p306_p8 = por %p305_p7, %p304_p6 }
  0x11   :  { %p307_p9 = pnand %p306_p8, %p300_p5 }
  0x13   :  { %310 = shalt.err (!%p307_p9)
}
  0x14   :  { %25 = dma.hbm_to_vmem [thread:$0]  %s408_s1, 128, %s23_s24, [#allocation4]  }
  0x15   :  { %s337_s7 = smov [#allocation7]  }
  0x16   :  { %s43_s8 = sshll.u32 %s337_s7, 4  ;;  %s44_s8 = int_to_ptr.vmem [resolvable:$true] %s43_s8 }
  0x17   :  { %s319_s9 = scalar_lea.vmem %s44_s8, 256  ;;  %p324_p11 = scmp.lt.s32.totalorder %s44_s8, %s44_s8 }
  0x18   :  { %p320_p10 = scmp.ne.s32.totalorder %s44_s8, %s319_s9  ;;  %p325_p12 = scmp.lt.s32.totalorder %s319_s9, %s319_s9 }
  0x1a   :  { %p326_p13 = por %p325_p12, %p324_p11 }
  0x1c   :  { %p327_p0 = pnand %p326_p13, %p320_p10 }
  0x1e   :  { %330 = shalt.err (!%p327_p0)
}
  0x1f   :  { %s338_s2 = smov 64   ;;  %s339_s10 = smov 4  }
  0x20   :  { %49 = dma.hbm_to_vmem [thread:$0]  %s411_s4, 256, %s44_s8, [#allocation6], %s338_s2, %s338_s2, %s339_s10  }
  0x21   :  { %331 = dma.done.wait [#allocation4], 128  }
  0x22   :  { %332 = vsyncadd [#allocation4], 4294967168 }
  0x23   :  { %333 = dma.done.wait [#allocation6], 384  }
  0x24   :  { %334 = vsyncadd [#allocation6], 4294966912  ;;  %v340_v0 = vmov 0.0   ;;  %vm341_vm0 = vmmov 0   ;;  %v262_v1 = vld [vmem:[#allocation7 + $0x8] sm:$0xff]   ;;  %v263_v2 = vld [vmem:[%s410_s3] sm:$0xff]   ;;  %v194_v26 = vstv %s407_s0 }
  0x25   :  { %239 = vmatprep.subr.bf16.mxu0 %v340_v0  ;;  %247 = vmatprep.subr.bf16.mxu1 %v340_v0  ;;  %v63_v3 = vld [vmem:[#allocation3] sm:$0xff]  ;;  %vm135_vm1 = vcmask 130048   ;;  %v264_v5 = vld [vmem:[#allocation7] sm:$0xff]   ;;  %v67_v6 = vld [vmem:[#allocation5] sm:$0xff]  ;;  %vm85_vm2 = vcmask 261120   ;;  %s342_s3 = smov 96  }
  0x26   :  { %249 = vmatprep.mubr.msk.bf16.mxu1 %vm341_vm0, %v340_v0  ;;  %243 = vmatprep.mubr.msk.bf16.mxu0 %vm341_vm0, %v340_v0  ;;  %v64_v4 = vpack.c.bf16 %v63_v3, %v63_v3  ;;  %v68_v7 = vpack.c.bf16 %v67_v6, %v67_v6  ;;  %v232_v11 = vld [vmem:[%s412_s5] ss:$0 sm:$0xff]  ;;  %s343_s16 = smov 32   ;;  %vm219_vm3 = vcmask 523264  }
  0x27   :  { %240 = vmatpush3.bf16.msra.mxu0 %v262_v1  ;;  %248 = vmatpush3.bf16.msra.mxu1 %v263_v2 }
  0x28   :  { %241 = vmatprep.subr.bf16.mxu0 %v340_v0 }
  0x2a   :  { %250 = vmatmul.mubr.msk.bf16.vlgmr.msra.gmra.mxu1 %vm135_vm1, %v64_v4 }
  0x2b   :  { %242 = vmatpush3.bf16.msra.mxu0 %v264_v5 }
  0x2e   :  { %244 = vmatmul.mubr.msk.bf16.vlgmr.msra.gmra.mxu0 %vm85_vm2, %v68_v7 }
  0xea   :  { %v173_v8 = vpop.f32.mrf.mxu1 }
  0xec   :  { %v251_v9 = vpop.f32.mrf.mxu1 }
  0xee   :  { %v123_v10 = vpop.f32.mrf.mxu0  ;;  %v176_v13 = vpop.f32.mrf.mxu1 }
  0xef   :  { %v174_v12 = vadd.f32 %v173_v8, %v123_v10 }
  0xf0   :  { %v245_v14 = vpop.f32.mrf.mxu0  ;;  %v252_v16 = vpop.f32.mrf.mxu1 }
  0xf1   :  { %v186_v15 = vadd.f32 %v232_v11, %v174_v12 }
  0xf2   :  { %v126_v17 = vpop.f32.mrf.mxu0 }
  0xf3   :  { %265 = vtanh.f32 %v186_v15  ;;  %v233_v20 = vmul.f32 -1.442695, %v186_v15 }
  0xf4   :  { %v246_v18 = vpop.f32.mrf.mxu0 }
  0xf5   :  { %267 = vpow2.f32 %v233_v20 }
 0x100   :  { %v266_v19 = vpop.eup %265 }
 0x101   :  { %197 = vrot.lane.b32.xlu0 %v266_v19, %s338_s2 }
 0x102   :  { %v268_v21 = vpop.eup %267 }
 0x103   :  { %v190_v22 = vadd.f32 1.0, %v268_v21 }
 0x105   :  { %269 = vrcp.f32 %v190_v22 }
 0x112   :  { %v270_v23 = vpop.eup %269 }
 0x113   :  { %v195_v27 = vmul.f32 %v270_v23, %v194_v26 }
 0x173   :  { %v198_v24 = vpop.permute.xlu0 %197 }
 0x174   :  { %v200_v25 = vmul.f32 %v270_v23, %v198_v24 }
 0x176   :  { %202 = vrot.lane.b32.xlu0 %v200_v25, %s342_s3 }
 0x1e8   :  { %v203_v28 = vpop.permute.xlu0 %202 }
 0x1e9   :  { %v205_v29 = vadd.f32 %v203_v28, %v195_v27 }
 0x1eb   :  { %215 = vrot.lane.b32.xlu0 %v205_v29, %s343_s16  ;;  %207 = vrot.lane.b32.xlu1 %v205_v29, %s338_s2 }
 0x25d   :  { %v208_v30 = vpop.permute.xlu1 %207  ;;  %v216_v32 = vpop.permute.xlu0 %215 }
 0x25e   :  { %v210_v31 = vmul.f32 %v270_v23, %v208_v30 }
 0x260   :  { %212 = vrot.lane.b32.xlu1 %v210_v31, %s338_s2 }
 0x2d2   :  { %v213_v33 = vpop.permute.xlu1 %212 }
 0x2d3   :  { %v218_v34 = vsel %vm85_vm2, %v213_v33, %v216_v32 }
 0x2d4   :  { %220 = vst.msk [vmem:[%s413_s6] sm:$0xff] %vm219_vm3, %v218_v34 }
 0x2d5   :  { %225 = vsyncpa [#allocation4], 1 }
 0x2d6   :  { %226 = vsyncpa [#allocation6], 1 }

</bundles_post_ra>
